<compile_context>
chip_gen: v7x
topology: tpu7x:2x2x1
jax: 0.10.0
libtpu: 0.0.40
codegen_flags: <defaults>
</compile_context>

<pallas_src>
import functools

import jax
import jax.numpy as jnp
from jax.experimental import pallas as pl
from jax.experimental.pallas import tpu as pltpu


def _select_softmax_kernel(x_ref, out_ref, *, tok0, tok1):
    """x_ref: [bB, V] logits block (native dtype); out_ref: [bB, 2] f32 probs."""
    x = x_ref[...].astype(jnp.float32)                              # full-width VPU cast
    col = jax.lax.broadcasted_iota(jnp.int32, x.shape, dimension=1)  # [bB, V]

    # Fused vocab gather: one-hot masked lane reductions over V.
    l0 = jnp.sum(jnp.where(col == tok0, x, 0.0), axis=-1, keepdims=True)  # [bB, 1]
    l1 = jnp.sum(jnp.where(col == tok1, x, 0.0), axis=-1, keepdims=True)  # [bB, 1]

    # Numerically stable 2-way softmax; write the two columns directly.
    m = jnp.maximum(l0, l1)
    e0 = jnp.exp(l0 - m)
    e1 = jnp.exp(l1 - m)
    inv = 1.0 / (e0 + e1)
    out_ref[:, 0:1] = e0 * inv
    out_ref[:, 1:2] = e1 * inv


def multiple_class_yn_t5_head(logits, class_token_ids=(2163, 465), block_b=None):
    """Pallas implementation of MultipleClassYNT5's head on the model logits.

    logits: [B, 1, V] (decoder output_size == 1) or [B, V], any float dtype.
    Returns [B, 2] float32 class probabilities.
    """
    tok0, tok1 = int(class_token_ids[0]), int(class_token_ids[1])

    if logits.ndim == 3:
        assert logits.shape[1] == 1, "output_size == 1 in the original module"
        logits = logits.reshape(logits.shape[0], logits.shape[2])   # squeeze(1)
    B, V = logits.shape
    assert 0 <= tok0 < V and 0 <= tok1 < V

    # Batch tiling: single block for small B, otherwise 512-row blocks
    # (multiple of 8 sublanes, satisfies the (8,128) BlockSpec rule).
    if block_b is None:
        block_b = B if B <= 1024 else 512
    pad = (-B) % block_b
    if pad:
        logits = jnp.pad(logits, ((0, pad), (0, 0)))
    Bp = B + pad

    # VMEM budget: double-buffered native-dtype input block + f32 working set
    # + tiny output, with headroom; capped well under v7x's 64 MiB physical.
    itemsize = jnp.dtype(logits.dtype).itemsize
    need = 2 * block_b * V * itemsize + 2 * block_b * V * 4 + 4 * block_b * 2 * 4
    vmem_limit = int(min(max(2 * need, 8 * 1024 * 1024), 48 * 1024 * 1024))

    kernel = functools.partial(_select_softmax_kernel, tok0=tok0, tok1=tok1)
    out = pl.pallas_call(
        kernel,
        out_shape=jax.ShapeDtypeStruct((Bp, 2), jnp.float32),
        grid=(Bp // block_b,),
        in_specs=[pl.BlockSpec((block_b, V), lambda i: (i, 0))],
        out_specs=pl.BlockSpec((block_b, 2), lambda i: (i, 0)),
        compiler_params=pltpu.CompilerParams(
            dimension_semantics=("parallel",),   # independent batch tiles -> v7x 2-TC
            vmem_limit_bytes=vmem_limit,
        ),
    )(logits)
    return out[:B]


def _reference(logits, class_token_ids):
    """Pure-JAX reference mirroring the PyTorch forward line-for-line."""
    x = logits
    if x.ndim == 3:
        x = x.reshape(x.shape[0], x.shape[2])
    x = x.astype(jnp.float32)
    sel = x[:, jnp.asarray(class_token_ids, dtype=jnp.int32)]
    return jax.nn.softmax(sel, axis=1)


if __name__ == "__main__":
    # Small deterministic demo consistent with the module: batch=2, one decoder
    # step (output_size=1), vocab=4096 (large enough to contain the module's
    # class token ids 2163 and 465).  Logits kept in native bf16 — the kernel
    # casts once on load.
    B, S, V = 2, 1, 4096
    CLASS_TOKENS = (2163, 465)   # token ids hard-coded in MultipleClassYNT5.forward

    key = jax.random.PRNGKey(0)
    logits = jax.random.normal(key, (B, S, V), dtype=jnp.bfloat16)

    out = multiple_class_yn_t5_head(logits, CLASS_TOKENS)
    out = jax.block_until_ready(out)

    ref = _reference(logits, CLASS_TOKENS)
    assert out.shape == (B, 2)
    assert jnp.allclose(out, ref, atol=1e-5, rtol=1e-5), (out, ref)
    assert jnp.allclose(jnp.sum(out, axis=-1), 1.0, atol=1e-5)

    print("KERNEL_OK")
</pallas_src>

<mosaic_0001>
module attributes {stable_mosaic.version = 11 : i64} {
  func.func @_select_softmax_kernel(%arg0: i32, %arg1: memref<2x4096xbf16, #tpu.memory_space<vmem>>, %arg2: memref<2x2xf32, #tpu.memory_space<vmem>>) attributes {dimension_semantics = [#tpu.dimension_semantics<parallel>], iteration_bounds = array<i64: 1>, scalar_prefetch = 0 : i64, scratch_operands = 0 : i64, tpu.core_type = #tpu.core_type<tc>, window_params = [{transform_indices = @transform_0, window_bounds = array<i64: 2, 4096>}, {transform_indices = @transform_1, window_bounds = array<i64: 2, 2>}]} {
    %c0 = arith.constant 0 : index
    %c0_0 = arith.constant 0 : index
    %0 = vector.load %arg1[%c0, %c0_0] : memref<2x4096xbf16, #tpu.memory_space<vmem>>, vector<2x4096xbf16>
    %1 = arith.extf %0 : vector<2x4096xbf16> to vector<2x4096xf32>
    %2 = tpu.iota {dimensions = array<i32: 1>} : vector<2x4096xi32>
    %c2163_i32 = arith.constant 2163 : i32
    %3 = vector.broadcast %c2163_i32 : i32 to vector<2x4096xi32>
    %4 = arith.cmpi eq, %2, %3 : vector<2x4096xi32>
    %cst = arith.constant 0.000000e+00 : f32
    %5 = vector.broadcast %cst : f32 to vector<2x4096xf32>
    %6 = arith.select %4, %1, %5 : vector<2x4096xi1>, vector<2x4096xf32>
    %cst_1 = arith.constant dense<0.000000e+00> : vector<2xf32>
    %7 = vector.multi_reduction <add>, %6, %cst_1 [1] : vector<2x4096xf32> to vector<2xf32>
    %8 = vector.shape_cast %7 : vector<2xf32> to vector<2x1xf32>
    %c465_i32 = arith.constant 465 : i32
    %9 = vector.broadcast %c465_i32 : i32 to vector<2x4096xi32>
    %10 = arith.cmpi eq, %2, %9 : vector<2x4096xi32>
    %cst_2 = arith.constant 0.000000e+00 : f32
    %11 = vector.broadcast %cst_2 : f32 to vector<2x4096xf32>
    %12 = arith.select %10, %1, %11 : vector<2x4096xi1>, vector<2x4096xf32>
    %cst_3 = arith.constant dense<0.000000e+00> : vector<2xf32>
    %13 = vector.multi_reduction <add>, %12, %cst_3 [1] : vector<2x4096xf32> to vector<2xf32>
    %14 = vector.shape_cast %13 : vector<2xf32> to vector<2x1xf32>
    %15 = arith.maximumf %8, %14 : vector<2x1xf32>
    %16 = arith.subf %8, %15 : vector<2x1xf32>
    %17 = math.exp %16 : vector<2x1xf32>
    %18 = arith.subf %14, %15 : vector<2x1xf32>
    %19 = math.exp %18 : vector<2x1xf32>
    %20 = arith.addf %17, %19 : vector<2x1xf32>
    %cst_4 = arith.constant 1.000000e+00 : f32
    %21 = vector.broadcast %cst_4 : f32 to vector<2x1xf32>
    %22 = arith.divf %21, %20 : vector<2x1xf32>
    %23 = arith.mulf %17, %22 : vector<2x1xf32>
    %c0_5 = arith.constant 0 : index
    %c0_6 = arith.constant 0 : index
    %24 = vector.load %arg2[%c0_5, %c0_6] : memref<2x2xf32, #tpu.memory_space<vmem>>, vector<2x1xf32>
    tpu.vector_store %arg2[%c0_5, %c0_6], %23 {strides = array<i32>} : memref<2x2xf32, #tpu.memory_space<vmem>>, vector<2x1xf32>,
    %25 = arith.mulf %19, %22 : vector<2x1xf32>
    %c0_7 = arith.constant 0 : index
    %c1 = arith.constant 1 : index
    %26 = vector.load %arg2[%c0_7, %c1] : memref<2x2xf32, #tpu.memory_space<vmem>>, vector<2x1xf32>
    tpu.vector_store %arg2[%c0_7, %c1], %25 {strides = array<i32>} : memref<2x2xf32, #tpu.memory_space<vmem>>, vector<2x1xf32>,
    return
  }
  func.func @transform_0(%arg0: i32) -> (i32, i32) {
    %c0_i32 = arith.constant 0 : i32
    %c0_i32_0 = arith.constant 0 : i32
    return %arg0, %c0_i32 : i32, i32
  }
  func.func @transform_1(%arg0: i32) -> (i32, i32) {
    %c0_i32 = arith.constant 0 : i32
    %c0_i32_0 = arith.constant 0 : i32
    return %arg0, %c0_i32 : i32, i32
  }
}

</mosaic_0001>

<bundles_post_ra>
// kernel: tpu_custom_call.1
= control target key start
LH: loop header
LB: loop body
LE: loop exit
PB: predicated region body
PF: predicated region fallthrough
CT: control target
= control target key end

     0   :  { %6 = vsyncpa [#allocation3], 0  ;;  %s626_s0 = inlined_call_operand.hbm [shape: bf16[2,4096], index: 0, kind: input, shape index: {}]   ;;  %s627_s1 = inlined_call_operand.hbm [shape: f32[2,2], index: 1, kind: output, shape index: {}]  }
   0x1   :  { %7 = vsyncpa [#allocation4], 0  ;;  %s589_s6 = smov [#allocation2]   ;;  %s541_s10 = scalar_lea.hbm %s626_s0, 512 }
   0x2   :  { %s14_s7 = sshll.u32 %s589_s6, 4  ;;  %p542_p0 = scmp.ne.s32.totalorder %s626_s0, %s541_s10  ;;  %s15_s7 = int_to_ptr.vmem [resolvable:$true] %s14_s7 }
   0x3   :  { %p545_p1 = scmp.lt.u32.totalorder %s541_s10, %s626_s0 }
   0x5   :  { %p547_p2 = pnand %p545_p1, %p542_p0 }
   0x7   :  { %550 = shalt.err (!%p547_p2)
}
   0x8   :  { %s551_s15 = scalar_lea.vmem %s15_s7, 512  ;;  %p556_p4 = scmp.lt.s32.totalorder %s15_s7, %s15_s7 }
   0x9   :  { %p552_p3 = scmp.ne.s32.totalorder %s15_s7, %s551_s15  ;;  %p557_p5 = scmp.lt.s32.totalorder %s551_s15, %s551_s15 }
   0xb   :  { %p558_p6 = por %p557_p5, %p556_p4 }
   0xd   :  { %p559_p7 = pnand %p558_p6, %p552_p3 }
   0xf   :  { %562 = shalt.err (!%p559_p7)
}
  0x10   :  { %17 = dma.hbm_to_vmem [thread:$0]  %s626_s0, 512, %s15_s7, [#allocation3]  }
  0x11   :  { %585 = dma.done.wait [#allocation3], 512  }
  0x12   :  { %586 = vsyncadd [#allocation3], 4294966784  ;;  %v33_v0 = vlaneseq  ;;  %v590_v1 = vmov 1983009808   ;;  %v23_v8 = vld [vmem:[#allocation2] ss:$16 sps:$4 sm:$0xff]  }
  0x13   :  { %v115_v2 = vunpack.c.l.s4 %v590_v1  ;;  %v29_v9 = vunpack.c.h.bf16 %v23_v8  ;;  %v25_v10 = vunpack.c.l.bf16 %v23_v8  ;;  %vm306_vm1 = vcmask 1041408   ;;  %s591_s0 = smov [#allocation5]  }
  0x14   :  { %v34_v3 = vand.u32 127, %v33_v0  ;;  %v118_v4 = vshrl.u32 %v33_v0, 7  ;;  %s523_s18 = sshll.u32 %s591_s0, 4  ;;  %vm512_vm3 = vcmask 1024   ;;  %vm515_vm4 = vcmask 9224   ;;  %s524_s18 = int_to_ptr.vmem [resolvable:$true] %s523_s18 }
  0x15   :  { %v116_v5 = vunpack.c.0.s8 %v115_v2  ;;  %v106_v13 = vcombine.high %v25_v10, %v25_v10  ;;  %s563_s19 = scalar_lea.vmem %s524_s18, 32  ;;  %p568_p9 = scmp.lt.s32.totalorder %s524_s18, %s524_s18 }
  0x16   :  { %v50_v6 = vadd.s32 2048, %v34_v3  ;;  %v37_v11 = vadd.s32 384, %v34_v3  ;;  %p564_p8 = scmp.ne.s32.totalorder %s524_s18, %s563_s19  ;;  %p569_p10 = scmp.lt.s32.totalorder %s563_s19, %s563_s19 }
  0x17   :  { %v119_v7 = vsub.s32 %v116_v5, %v118_v4 }
  0x18   :  { %vm82_vm0 = vcmp.eq.s32.totalorder %v50_v6, 2163  ;;  %vm375_vm2 = vcmp.eq.s32.totalorder %v37_v11, 465  ;;  %p570_p11 = por %p569_p10, %p568_p9 }
  0x19   :  { %v181_v12 = vrot.slane %v29_v9, %v119_v7  ;;  %v120_v15 = vrot.slane %v106_v13, %v119_v7 }
  0x1a   :  { %p571_p12 = pnand %p570_p11, %p564_p8 }
  0x1b   :  { %v290_v14 = vsel %vm82_vm0, %v181_v12, 0.0  ;;  %v122_v17 = vcombine.high %v120_v15, %v120_v15 }
  0x1c   :  { %v338_v16 = vsel %vm306_vm1, %v290_v14, 0.0 }
  0x1d   :  { %370 = vadd.xlane.f32.xlu0 %v338_v16  ;;  %v407_v18 = vsel %vm375_vm2, %v122_v17, 0.0 }
  0x1e   :  { %v441_v19 = vsel %vm306_vm1, %v407_v18, 0.0 }
  0x21   :  { %499 = vadd.xlane.f32.xlu0 %v441_v19 }
  0xaa   :  { %v371_v20 = vpop.xlane.xlu0 %370 }
  0xae   :  { %v500_v21 = vpop.xlane.xlu0 %499 }
  0xaf   :  { %v501_v22 = vmax.f32 %v371_v20, %v500_v21 }
  0xb1   :  { %v502_v23 = vsub.f32 %v371_v20, %v501_v22  ;;  %v505_v24 = vsub.f32 %v500_v21, %v501_v22 }
  0xb3   :  { %v503_v25 = vmul.f32 1.442695, %v502_v23  ;;  %v506_v26 = vmul.f32 1.442695, %v505_v24 }
  0xb5   :  { %535 = vpow2.f32 %v503_v25 }
  0xb6   :  { %537 = vpow2.f32 %v506_v26 }
  0xbf   :  { %v536_v27 = vpop.eup %535 }
  0xc0   :  { %v538_v28 = vpop.eup %537 }
  0xc1   :  { %v508_v29 = vadd.f32 %v538_v28, %v536_v27 }
  0xc3   :  { %539 = vrcp.f32 %v508_v29 }
  0xcd   :  { %v540_v30 = vpop.eup %539 }
  0xce   :  { %v511_v31 = vmul.f32 %v540_v30, %v536_v27  ;;  %v514_v32 = vmul.f32 %v540_v30, %v538_v28 }
  0xd0   :  { %513 = vst.msk [vmem:[#allocation5] sm:$0x3] %vm512_vm3, %v511_v31 }
  0xd1   :  { %516 = vst.msk [vmem:[#allocation5] sm:$0x3] %vm515_vm4, %v514_v32 }
  0xd2   :  { %574 = shalt.err (!%p571_p12)
}
  0xd3   :  { %s575_s22 = scalar_lea.hbm %s627_s1, 32 }
  0xd4   :  { %p576_p13 = scmp.ne.s32.totalorder %s627_s1, %s575_s22  ;;  %p579_p0 = scmp.lt.u32.totalorder %s575_s22, %s627_s1 }
  0xd6   :  { %p581_p1 = pnand %p579_p0, %p576_p13 }
  0xd8   :  { %584 = shalt.err (!%p581_p1)
}
  0xd9   :  { %526 = dma.vmem_to_hbm [thread:$0]  %s524_s18, 32, %s627_s1, [#allocation4]  }
  0xda   :  { %587 = dma.done.wait [#allocation4], 32  }
  0xdb   :  { %588 = vsyncadd [#allocation4], 4294967264 }
  0xdc   :  { %530 = vsyncpa [#allocation3], 1 }
  0xdd   :  { %531 = vsyncpa [#allocation4], 1 }

</bundles_post_ra>
